<compile_context>
chip_gen: v7x
topology: tpu7x:2x2x1
jax: 0.10.0
libtpu: 0.0.40
codegen_flags: <defaults>
</compile_context>

<pallas_src>
import jax
import jax.numpy as jnp
from jax.experimental import pallas as pl
from jax.experimental.pallas import tpu as pltpu

# ---- configuration (small, consistent with the module) ---------------------
BATCH = 2
IN_CH = 32
HIDDEN_CH = 128        # lane-dense hidden activation (128 lanes)
OUT_CH = 32
KERNEL_SIZE = 3
T_LEN = 16
CAUSAL = False         # module default
DROPOUT_P = 0.0

if CAUSAL:
    PAD_L, PAD_R = KERNEL_SIZE - 1, 0
else:
    PAD_L, PAD_R = (KERNEL_SIZE - 1) // 2, KERNEL_SIZE // 2


def _unfold(a, c):
    """(T, c) -> (T, k*c): zero-pad the time axis and concat the k taps on lanes."""
    if KERNEL_SIZE == 1:
        return a
    parts = []
    if PAD_L:
        parts.append(jnp.zeros((PAD_L, c), a.dtype))
    parts.append(a)
    if PAD_R:
        parts.append(jnp.zeros((PAD_R, c), a.dtype))
    ap = jnp.concatenate(parts, axis=0)                        # (T + k - 1, c)
    taps = [ap[dk:dk + T_LEN, :] for dk in range(KERNEL_SIZE)]
    return jnp.concatenate(taps, axis=-1)                      # (T, k*c)


# ---- Pallas kernel: fused  mask -> conv1 -> relu -> mask -> conv2 -> mask ---
def _ffn_kernel(x_ref, mask_ref, w1_ref, b1_ref, w2_ref, b2_ref, out_ref):
    x = x_ref[0]            # (T, Cin)  time-major input, f32
    m = mask_ref[0]         # (T, 1)    f32

    # --- conv1: mask, unfold to (T, k*Cin), single wide MXU matmul, bias ---
    xm = x * m
    xu = _unfold(xm, IN_CH).astype(jnp.bfloat16)                  # (T, k*Cin)
    h = jnp.dot(xu, w1_ref[...],
                preferred_element_type=jnp.float32) + b1_ref[...]  # (T, Hid) f32
    h = jnp.maximum(h, 0.0)                                       # ReLU
    # dropout: identity (dropout_p = 0 / eval)                    # TODO(synk): p > 0

    # --- conv2: mask, unfold to (T, k*Hid) (lane-aligned taps), MXU matmul ---
    hm = h * m
    hu = _unfold(hm, HIDDEN_CH).astype(jnp.bfloat16)              # (T, k*Hid)
    y = jnp.dot(hu, w2_ref[...],
                preferred_element_type=jnp.float32) + b2_ref[...]  # (T, Out) f32

    out_ref[0] = (y * m).astype(out_ref.dtype)                    # final mask


# ---- wrapper ----------------------------------------------------------------
def ffn_forward(x, x_mask, params):
    """x: (B, Cin, T) f32; x_mask: (B, 1, T) f32. Returns (B, OUT_CH, T) f32."""
    B, Cin, Tt = x.shape
    Hid = params["w1"].shape[0]
    Out = params["w2"].shape[0]
    K = params["w1"].shape[2]

    x_t = jnp.transpose(x, (0, 2, 1))           # (B, T, Cin)   time-major
    m_t = jnp.transpose(x_mask, (0, 2, 1))      # (B, T, 1)

    # Conv1d weight (O, I, K) -> unfolded matmul weight (K*I, O), bf16 for the MXU.
    w1u = jnp.transpose(params["w1"], (2, 1, 0)).reshape(K * Cin, Hid).astype(jnp.bfloat16)
    w2u = jnp.transpose(params["w2"], (2, 1, 0)).reshape(K * Hid, Out).astype(jnp.bfloat16)
    b1 = params["b1"].reshape(1, Hid).astype(jnp.float32)
    b2 = params["b2"].reshape(1, Out).astype(jnp.float32)

    full2d = lambda s: pl.BlockSpec(s, lambda b: (0, 0))

    out = pl.pallas_call(
        _ffn_kernel,
        out_shape=jax.ShapeDtypeStruct((B, Tt, Out), jnp.float32),
        grid=(B,),
        in_specs=[
            pl.BlockSpec((1, Tt, Cin), lambda b: (b, 0, 0)),   # x (time-major)
            pl.BlockSpec((1, Tt, 1), lambda b: (b, 0, 0)),     # mask
            full2d((K * Cin, Hid)),                            # w1 (unfolded, bf16)
            full2d((1, Hid)),                                  # b1
            full2d((K * Hid, Out)),                            # w2 (unfolded, bf16)
            full2d((1, Out)),                                  # b2
        ],
        out_specs=pl.BlockSpec((1, Tt, Out), lambda b: (b, 0, 0)),
        compiler_params=pltpu.CompilerParams(dimension_semantics=("parallel",)),
    )(x_t, m_t, w1u, b1, w2u, b2)

    return jnp.transpose(out, (0, 2, 1))        # (B, Out, T) to match PyTorch layout


# ---- deterministic parameter init (Conv1d-style uniform bounds) -------------
def init_params(key):
    ks = jax.random.split(key, 4)
    b1b = 1.0 / (IN_CH * KERNEL_SIZE) ** 0.5
    b2b = 1.0 / (HIDDEN_CH * KERNEL_SIZE) ** 0.5
    u = lambda k, shp, b: jax.random.uniform(k, shp, jnp.float32, -b, b)
    return {
        "w1": u(ks[0], (HIDDEN_CH, IN_CH, KERNEL_SIZE), b1b),
        "b1": u(ks[1], (HIDDEN_CH,), b1b),
        "w2": u(ks[2], (OUT_CH, HIDDEN_CH, KERNEL_SIZE), b2b),
        "b2": u(ks[3], (OUT_CH,), b2b),
    }


# ---- pure-JAX reference (mirrors the PyTorch math, f32 throughout) ----------
def reference_forward(x, x_mask, p):
    def conv1d(a, w, b):
        y = jax.lax.conv_general_dilated(
            a, w, window_strides=(1,), padding=[(PAD_L, PAD_R)],
            dimension_numbers=("NCH", "OIH", "NCH"))
        return y + b[None, :, None]

    h = conv1d(x * x_mask, p["w1"], p["b1"])
    h = jnp.maximum(h, 0.0)
    y = conv1d(h * x_mask, p["w2"], p["b2"])
    return y * x_mask


if __name__ == "__main__":
    key = jax.random.PRNGKey(0)
    kx, kp = jax.random.split(key)

    x = jax.random.normal(kx, (BATCH, IN_CH, T_LEN), jnp.float32)      # (b, c, t)

    # sequence mask (b, 1, t) from per-batch valid lengths
    lengths = jnp.array([T_LEN, 10], dtype=jnp.int32)
    pos = jnp.arange(T_LEN)
    x_mask = (pos[None, :] < lengths[:, None]).astype(jnp.float32)[:, None, :]

    params = init_params(kp)

    out = ffn_forward(x, x_mask, params)
    out = jax.block_until_ready(out)
    assert out.shape == (BATCH, OUT_CH, T_LEN)

    ref = reference_forward(x, x_mask, params)
    if not jnp.allclose(out, ref, atol=2e-2, rtol=2e-2):
        raise AssertionError("Pallas output mismatch vs pure-JAX reference")

    print("KERNEL_OK")
</pallas_src>

<mosaic_0001>
module attributes {stable_mosaic.version = 11 : i64} {
  func.func @_ffn_kernel(%arg0: i32, %arg1: memref<1x16x32xf32, #tpu.memory_space<vmem>>, %arg2: memref<1x16x1xf32, #tpu.memory_space<vmem>>, %arg3: memref<96x128xbf16, #tpu.memory_space<vmem>>, %arg4: memref<1x128xf32, #tpu.memory_space<vmem>>, %arg5: memref<384x32xbf16, #tpu.memory_space<vmem>>, %arg6: memref<1x32xf32, #tpu.memory_space<vmem>>, %arg7: memref<1x16x32xf32, #tpu.memory_space<vmem>>) attributes {dimension_semantics = [#tpu.dimension_semantics<parallel>], iteration_bounds = array<i64: 2>, scalar_prefetch = 0 : i64, scratch_operands = 0 : i64, tpu.core_type = #tpu.core_type<tc>, window_params = [{transform_indices = @transform_0, window_bounds = array<i64: 1, 16, 32>}, {transform_indices = @transform_1, window_bounds = array<i64: 1, 16, 1>}, {pipeline_mode = #tpu.pipeline_mode<synchronous>, transform_indices = @transform_2, window_bounds = array<i64: 96, 128>}, {pipeline_mode = #tpu.pipeline_mode<synchronous>, transform_indices = @transform_3, window_bounds = array<i64: 1, 128>}, {pipeline_mode = #tpu.pipeline_mode<synchronous>, transform_indices = @transform_4, window_bounds = array<i64: 384, 32>}, {pipeline_mode = #tpu.pipeline_mode<synchronous>, transform_indices = @transform_5, window_bounds = array<i64: 1, 32>}, {transform_indices = @transform_6, window_bounds = array<i64: 1, 16, 32>}]} {
    %c0 = arith.constant 0 : index
    %c0_0 = arith.constant 0 : index
    %c0_1 = arith.constant 0 : index
    %0 = vector.load %arg1[%c0, %c0_0, %c0_1] : memref<1x16x32xf32, #tpu.memory_space<vmem>>, vector<1x16x32xf32>
    %1 = vector.shape_cast %0 : vector<1x16x32xf32> to vector<16x32xf32>
    %c0_2 = arith.constant 0 : index
    %c0_3 = arith.constant 0 : index
    %c0_4 = arith.constant 0 : index
    %2 = vector.load %arg2[%c0_2, %c0_3, %c0_4] : memref<1x16x1xf32, #tpu.memory_space<vmem>>, vector<1x16x1xf32>
    %3 = vector.shape_cast %2 : vector<1x16x1xf32> to vector<16x1xf32>
    %4 = vector.broadcast %3 : vector<16x1xf32> to vector<16x32xf32>
    %5 = arith.mulf %1, %4 : vector<16x32xf32>
    %cst = arith.constant 0.000000e+00 : f32
    %6 = vector.broadcast %cst : f32 to vector<1x32xf32>
    %cst_5 = arith.constant 0.000000e+00 : f32
    %7 = vector.broadcast %cst_5 : f32 to vector<1x32xf32>
    %8 = tpu.concatenate %6, %5, %7 in 0 : vector<1x32xf32>, vector<16x32xf32>, vector<1x32xf32> -> vector<18x32xf32>
    %9 = vector.extract_strided_slice %8 {offsets = [0, 0], sizes = [16, 32], strides = [1, 1]} : vector<18x32xf32> to vector<16x32xf32>
    %10 = vector.extract_strided_slice %8 {offsets = [1, 0], sizes = [16, 32], strides = [1, 1]} : vector<18x32xf32> to vector<16x32xf32>
    %11 = vector.extract_strided_slice %8 {offsets = [2, 0], sizes = [16, 32], strides = [1, 1]} : vector<18x32xf32> to vector<16x32xf32>
    %12 = tpu.concatenate %9, %10, %11 in 1 : vector<16x32xf32>, vector<16x32xf32>, vector<16x32xf32> -> vector<16x96xf32>
    %13 = arith.truncf %12 : vector<16x96xf32> to vector<16x96xbf16>
    %c0_6 = arith.constant 0 : index
    %c0_7 = arith.constant 0 : index
    %14 = vector.load %arg3[%c0_6, %c0_7] : memref<96x128xbf16, #tpu.memory_space<vmem>>, vector<96x128xbf16>
    %cst_8 = arith.constant dense<0.000000e+00> : vector<16x128xf32>
    %15 = tpu.matmul %13, %14, %cst_8 {dimension_numbers = #tpu.dot_dimension_numbers<[1], [0], [0], [1], [0, 0, 1, 1], [], []>} : vector<16x96xbf16>, vector<96x128xbf16>, vector<16x128xf32> -> vector<16x128xf32>
    %c0_9 = arith.constant 0 : index
    %c0_10 = arith.constant 0 : index
    %16 = vector.load %arg4[%c0_9, %c0_10] : memref<1x128xf32, #tpu.memory_space<vmem>>, vector<1x128xf32>
    %17 = vector.broadcast %16 : vector<1x128xf32> to vector<16x128xf32>
    %18 = arith.addf %15, %17 : vector<16x128xf32>
    %cst_11 = arith.constant 0.000000e+00 : f32
    %19 = vector.broadcast %cst_11 : f32 to vector<16x128xf32>
    %20 = arith.maximumf %18, %19 : vector<16x128xf32>
    %21 = vector.broadcast %3 : vector<16x1xf32> to vector<16x128xf32>
    %22 = arith.mulf %20, %21 : vector<16x128xf32>
    %cst_12 = arith.constant 0.000000e+00 : f32
    %23 = vector.broadcast %cst_12 : f32 to vector<1x128xf32>
    %cst_13 = arith.constant 0.000000e+00 : f32
    %24 = vector.broadcast %cst_13 : f32 to vector<1x128xf32>
    %25 = tpu.concatenate %23, %22, %24 in 0 : vector<1x128xf32>, vector<16x128xf32>, vector<1x128xf32> -> vector<18x128xf32>
    %26 = vector.extract_strided_slice %25 {offsets = [0, 0], sizes = [16, 128], strides = [1, 1]} : vector<18x128xf32> to vector<16x128xf32>
    %27 = vector.extract_strided_slice %25 {offsets = [1, 0], sizes = [16, 128], strides = [1, 1]} : vector<18x128xf32> to vector<16x128xf32>
    %28 = vector.extract_strided_slice %25 {offsets = [2, 0], sizes = [16, 128], strides = [1, 1]} : vector<18x128xf32> to vector<16x128xf32>
    %29 = tpu.concatenate %26, %27, %28 in 1 : vector<16x128xf32>, vector<16x128xf32>, vector<16x128xf32> -> vector<16x384xf32>
    %30 = arith.truncf %29 : vector<16x384xf32> to vector<16x384xbf16>
    %c0_14 = arith.constant 0 : index
    %c0_15 = arith.constant 0 : index
    %31 = vector.load %arg5[%c0_14, %c0_15] : memref<384x32xbf16, #tpu.memory_space<vmem>>, vector<384x32xbf16>
    %cst_16 = arith.constant dense<0.000000e+00> : vector<16x32xf32>
    %32 = tpu.matmul %30, %31, %cst_16 {dimension_numbers = #tpu.dot_dimension_numbers<[1], [0], [0], [1], [0, 0, 1, 1], [], []>} : vector<16x384xbf16>, vector<384x32xbf16>, vector<16x32xf32> -> vector<16x32xf32>
    %c0_17 = arith.constant 0 : index
    %c0_18 = arith.constant 0 : index
    %33 = vector.load %arg6[%c0_17, %c0_18] : memref<1x32xf32, #tpu.memory_space<vmem>>, vector<1x32xf32>
    %34 = vector.broadcast %33 : vector<1x32xf32> to vector<16x32xf32>
    %35 = arith.addf %32, %34 : vector<16x32xf32>
    %36 = vector.broadcast %3 : vector<16x1xf32> to vector<16x32xf32>
    %37 = arith.mulf %35, %36 : vector<16x32xf32>
    %c0_19 = arith.constant 0 : index
    %c0_20 = arith.constant 0 : index
    %c0_21 = arith.constant 0 : index
    %38 = vector.load %arg7[%c0_19, %c0_20, %c0_21] : memref<1x16x32xf32, #tpu.memory_space<vmem>>, vector<1x16x32xf32>
    %39 = vector.shape_cast %38 : vector<1x16x32xf32> to vector<16x32xf32>
    %40 = vector.shape_cast %37 : vector<16x32xf32> to vector<1x16x32xf32>
    tpu.vector_store %arg7[%c0_19, %c0_20, %c0_21], %40 {strides = array<i32>} : memref<1x16x32xf32, #tpu.memory_space<vmem>>, vector<1x16x32xf32>,
    return
  }
  func.func @transform_0(%arg0: i32) -> (i32, i32, i32) {
    %c0_i32 = arith.constant 0 : i32
    %c0_i32_0 = arith.constant 0 : i32
    %c0_i32_1 = arith.constant 0 : i32
    return %arg0, %c0_i32, %c0_i32_0 : i32, i32, i32
  }
  func.func @transform_1(%arg0: i32) -> (i32, i32, i32) {
    %c0_i32 = arith.constant 0 : i32
    %c0_i32_0 = arith.constant 0 : i32
    %c0_i32_1 = arith.constant 0 : i32
    return %arg0, %c0_i32, %c0_i32_0 : i32, i32, i32
  }
  func.func @transform_2(%arg0: i32) -> (i32, i32) {
    %c0_i32 = arith.constant 0 : i32
    %c0_i32_0 = arith.constant 0 : i32
    %c0_i32_1 = arith.constant 0 : i32
    return %c0_i32, %c0_i32_0 : i32, i32
  }
  func.func @transform_3(%arg0: i32) -> (i32, i32) {
    %c0_i32 = arith.constant 0 : i32
    %c0_i32_0 = arith.constant 0 : i32
    %c0_i32_1 = arith.constant 0 : i32
    return %c0_i32, %c0_i32_0 : i32, i32
  }
  func.func @transform_4(%arg0: i32) -> (i32, i32) {
    %c0_i32 = arith.constant 0 : i32
    %c0_i32_0 = arith.constant 0 : i32
    %c0_i32_1 = arith.constant 0 : i32
    return %c0_i32, %c0_i32_0 : i32, i32
  }
  func.func @transform_5(%arg0: i32) -> (i32, i32) {
    %c0_i32 = arith.constant 0 : i32
    %c0_i32_0 = arith.constant 0 : i32
    %c0_i32_1 = arith.constant 0 : i32
    return %c0_i32, %c0_i32_0 : i32, i32
  }
  func.func @transform_6(%arg0: i32) -> (i32, i32, i32) {
    %c0_i32 = arith.constant 0 : i32
    %c0_i32_0 = arith.constant 0 : i32
    %c0_i32_1 = arith.constant 0 : i32
    return %arg0, %c0_i32, %c0_i32_0 : i32, i32, i32
  }
}

</mosaic_0001>

<bundles_post_ra>
// kernel: tpu_custom_call.1
= control target key start
LH: loop header
LB: loop body
LE: loop exit
PB: predicated region body
PF: predicated region fallthrough
CT: control target
= control target key end

     0   :  { %11 = vsyncpa [#allocation3], 0  ;;  %s1410_s0 = inlined_call_operand.vmem [shape: f32[2,16,32], index: 0, kind: input, shape index: {}]   ;;  %s1411_s1 = inlined_call_operand.vmem [shape: f32[2,16,1], index: 1, kind: input, shape index: {}]   ;;  %s1412_s2 = inlined_call_operand.vmem [shape: bf16[96,128], index: 2, kind: input, shape index: {}]   ;;  %s1413_s3 = inlined_call_operand.vmem [shape: f32[1,128], index: 3, kind: input, shape index: {}]   ;;  %s1414_s4 = inlined_call_operand.vmem [shape: bf16[384,32], index: 4, kind: input, shape index: {}]   ;;  %s1415_s5 = inlined_call_operand.vmem [shape: f32[1,32], index: 5, kind: input, shape index: {}]   ;;  %s1416_s6 = inlined_call_operand.hbm [shape: f32[2,16,32], index: 6, kind: output, shape index: {}]  }
   0x1   :  { %13 = vsyncpa [#allocation3 + $0x1], 0  ;;  %s1161_s21 = smov 0   ;;  %s1163_s22 = smov 0  }
   0x2   :  { %s1165_s23 = smov 0   ;;  %s1167_s24 = smov 0  }
   0x3 LB: > { %s1182_s25 = sadd.s32 4294967295, %s1115_s24   ;;  %s837_s26 = sadd.s32 4294967294, %s1115_s24   ;;  %s1115_s24 = sphi %s1167_s24, %s1422_s24   ;;  %s1111_s23 = sphi %s1165_s23, %s1421_s23   ;;  %s1107_s22 = sphi %s1163_s22, %s1420_s22   ;;  %s1103_s21 = sphi %s1161_s21, %s1419_s21  }
   0x4   : > { %s1186_s27 = sadd.s32 1, %s1115_s24   ;;  %s162_s28 = sadd.s32 1, %s1111_s23 }
   0x5   : > { %s159_s29 = ssub.s32 %s1115_s24, %s1186_s27  ;;  %p172_p0 = scmp.ne.s32.totalorder %s1111_s23, %s1107_s22 }
   0x6   : > { %p160_p1 = scmp.eq.s32.totalorder %s159_s29, 0  ;;  %p173_p2 = scmp.eq.s32.totalorder %s1182_s25, 1 }
   0x7   : > { %p178_p3 = scmp.ne.s32.totalorder %s1107_s22, %s1103_s21  ;;  %p179_p4 = scmp.eq.s32.totalorder %s837_s26, 1 }
   0x8   : > { %s1197_s30 = scalar_select %p160_p1, %s1111_s23, %s162_s28  }
   0x9   : > { %p1199_p5 = por %p173_p2, %p172_p0  ;;  %p1203_p6 = por %p179_p4, %p178_p3 }
   0xa   : > { %p840_p7 = scmp.ge.s32.totalorder %s1115_s24, 1  ;;  %p225_p8 = scmp.lt.s32.totalorder %s1115_s24, 3 }
   0xc   : > { %p226_p9 = pnand %p840_p7, %p225_p8 }
   0xd   : > { %p260_p10 = scmp.lt.s32.totalorder (!%p226_p9), %s1182_s25, 1  ;;  %v1117_v0 = vmov (!%p226_p9), 0   ;;  %v1023_v3 = vld [vmem:[%s1412_s2] sm:$0xff] (!%p226_p9)   ;;  %v1118_v4 = vmov (!%p226_p9), 0.0   ;;  %v1024_v5 = vld [vmem:[%s1412_s2 + $0x8] sm:$0xff] (!%p226_p9)   ;;  %v1025_v6 = vld [vmem:[%s1412_s2 + $0x10] sm:$0xff] (!%p226_p9)  }
   0xe   : > { %229 = sbr.rel (%p226_p9) target bundleno = 759 (0x2f7), region = 44  ;;  %1012 = vset.pattern.permute.xlu0 (!%p226_p9), %v1117_v0  ;;  %929 = vmatprep.subr.bf16.mxu0 (!%p226_p9), %v1118_v4  ;;  %v1026_v7 = vld [vmem:[%s1412_s2 + $0x18] sm:$0xff] (!%p226_p9)   ;;  %v1027_v12 = vld [vmem:[%s1412_s2 + $0x20] sm:$0xff] (!%p226_p9)   ;;  %vm289_vm0 = vcmask (!%p226_p9), 1040384   ;;  %v1028_v17 = vld [vmem:[%s1412_s2 + $0x28] sm:$0xff] (!%p226_p9)   ;;  %vm300_vm1 = vcmask (!%p226_p9), 1046528  }
   0xf   : > { %930 = vmatpush3.bf16.msra.mxu0 (!%p226_p9), %v1023_v3  ;;  %vm1119_vm2 = vmmov (!%p226_p9), 0   ;;  %vm312_vm3 = vcmask (!%p226_p9), 1045504   ;;  %v1029_v26 = vld [vmem:[%s1414_s4 + $0x40] sm:$0xff] (!%p226_p9)   ;;  %v1032_v32 = vld [vmem:[%s1414_s4 + $0x48] sm:$0xff] (!%p226_p9)   ;;  %s1120_s20 = smov (!%p226_p9), 32   ;;  %v1035_v37 = vld [vmem:[%s1414_s4 + $0x50] sm:$0xff] (!%p226_p9)  }
  0x10   : > { %931 = vmatprep.subr.bf16.mxu0 (!%p226_p9), %v1118_v4  ;;  %941 = vmatprep.mubr.msk.bf16.mxu0 (!%p226_p9), %vm1119_vm2, %v1118_v4  ;;  %v1031_v30 = vld [vmem:[%s1414_s4] sm:$0xff] (!%p226_p9)   ;;  %v1034_v35 = vld [vmem:[%s1414_s4 + $0x8] sm:$0xff] (!%p226_p9)   ;;  %s1121_s11 = smov (!%p226_p9), 64   ;;  %v1037_v38 = vld [vmem:[%s1414_s4 + $0x10] sm:$0xff] (!%p226_p9)   ;;  %vm324_vm4 = vcmask (!%p226_p9), 261120   ;;  %vm327_vm5 = vcmask (!%p226_p9), 523264  }
  0x11   : > { %898 = vmatprep.subr.bf16.mxu1 (!%p226_p9), %v1029_v26  ;;  %v1038_v39 = vld [vmem:[%s1414_s4 + $0x58] sm:$0xff] (!%p226_p9)   ;;  %vm386_vm6 = vcmask (!%p226_p9), 785408   ;;  %v1030_v51 = vld [vmem:[%s1414_s4 + $0x80] sm:$0xff] (!%p226_p9)   ;;  %v1033_v53 = vld [vmem:[%s1414_s4 + $0x88] sm:$0xff] (!%p226_p9)   ;;  %vm1122_vm8 = vmmov (!%p226_p9), 1   ;;  %s257_s26 = sand.u32 (!%p226_p9), 1, %s1107_s22  }
  0x12   : > { %899 = vmatpush3.bf16.msra.mxu1 (!%p226_p9), %v1031_v30  ;;  %v1040_v40 = vld [vmem:[%s1414_s4 + $0x18] sm:$0xff] (!%p226_p9)   ;;  %v1036_v54 = vld [vmem:[%s1414_s4 + $0x90] sm:$0xff] (!%p226_p9)   ;;  %v1041_v56 = vld [vmem:[%s1414_s4 + $0x60] sm:$0xff] (!%p226_p9)   ;;  %s841_s28 = sshll.u32 (!%p226_p9), %s257_s26, 4  ;;  %s1123_s17 = smov (!%p226_p9), [#allocation2]  }
  0x13   : > { %932 = vmatpush3.bf16.msra.mxu0 (!%p226_p9), %v1024_v5  ;;  %900 = vmatprep.subr.bf16.mxu1 (!%p226_p9), %v1032_v32  ;;  %v1039_v55 = vld [vmem:[%s1414_s4 + $0x98] sm:$0xff] (!%p226_p9)   ;;  %v1042_v57 = vld [vmem:[%s1414_s4 + $0xa0] sm:$0xff] (!%p226_p9)   ;;  %v1044_v59 = vld [vmem:[%s1414_s4 + $0x68] sm:$0xff] (!%p226_p9)   ;;  %s259_s12 = scalar_lea.vmem (!%p226_p9), [#allocation2], %s841_s28  ;;  %s1057_s18 = sshll.u32 (!%p226_p9), %s1123_s17, 4  ;;  %s1058_s18 = int_to_ptr.vmem [resolvable:$false] %s1057_s18 }
  0x14   : > { %933 = vmatprep.subr.bf16.mxu0 (!%p226_p9), %v1118_v4  ;;  %v1043_v58 = vld [vmem:[%s1414_s4 + $0x20] sm:$0xff] (!%p226_p9)   ;;  %v1045_v60 = vld [vmem:[%s1414_s4 + $0xa8] sm:$0xff] (!%p226_p9)   ;;  %v1047_v62 = vld [vmem:[%s1414_s4 + $0x70] sm:$0xff] (!%p226_p9)   ;;  %s1059_s19 = scalar_lea.vmem (!%p226_p9), %s1058_s18, 512 }
  0x15   : > { %s261_s9 = scalar_select %p260_p10, %s1182_s25, 1  ;;  %v1046_v61 = vld [vmem:[%s1414_s4 + $0x28] sm:$0xff]   ;;  %v1048_v63 = vld [vmem:[%s1414_s4 + $0xb0] sm:$0xff]   ;;  %v1052_v3 = vld [vmem:[%s1414_s4 + $0x38] sm:$0xff]  }
  0x16   : > { %901 = vmatpush3.bf16.msra.mxu1 %v1034_v35  ;;  %v1049_v0 = vld [vmem:[%s1414_s4 + $0x30] sm:$0xff]   ;;  %v846_v5 = vld [vmem:[%s1413_s3] ss:$0 sm:$0xff]  ;;  %vm879_vm7 = vmneg %vm289_vm0 }
  0x17   : > { %s888_s10 = sshll.u32 %s261_s9, 4  ;;  %934 = vmatpush3.bf16.msra.mxu0 %v1025_v6  ;;  %902 = vmatprep.subr.bf16.mxu1 %v1035_v37  ;;  %vm880_vm9 = vmpackc.low %vm1122_vm8, %vm879_vm7 }
  0x18   : > { %s269_s13 = scalar_lea.vmem %s1411_s1, %s888_s10  ;;  %935 = vmatprep.subr.bf16.mxu0 %v1118_v4  ;;  %s264_s9 = scalar_lea.vmem %s1410_s0, %s888_s10 }
  0x19   : > { %v273_v1 = vld [vmem:[%s269_s13] sm:$0xff]  ;;  %v274_v2 = vld [vmem:[%s269_s13 + $0x8] sm:$0xff]  ;;  %s763_s10 = sshll.u32 %s259_s12, 4  ;;  %s1364_s10 = int_to_ptr.vmem [resolvable:$true] %s763_s10 }
  0x1a   : > { %277 = vperm.xlu0 %1012, %v273_v1   ;;  %v271_v8 = vld [vmem:[%s264_s9] sm:$0xff]  ;;  %v272_v11 = vld [vmem:[%s264_s9 + $0x8] sm:$0xff]  ;;  %903 = vmatpush3.bf16.msra.mxu1 %v1037_v38  ;;  %v1050_v1 = vld [vmem:[%s1414_s4 + $0x78] sm:$0xff]   ;;  %s1053_s16 = scalar_lea.vmem %s1364_s10, 256  ;;  %p1060_p0 = scmp.lt.s32.totalorder %s1364_s10, %s1058_s18 }
  0x1b   : > { %936 = vmatpush3.bf16.msra.mxu0 %v1026_v7  ;;  %904 = vmatprep.subr.bf16.mxu1 %v1038_v39  ;;  %v854_v38 = vld [vmem:[%s1415_s5] ss:$0 sm:$0xff]  ;;  %p1054_p11 = scmp.ne.s32.totalorder %s1364_s10, %s1053_s16  ;;  %p1061_p1 = scmp.lt.s32.totalorder %s1059_s19, %s1053_s16 }
  0x1c   : > { %937 = vmatprep.subr.bf16.mxu0 %v1118_v4 }
  0x1d   : > { %p1055_p12 = pnand %p1054_p11, %p1199_p5  ;;  %p1062_p2 = por %p1061_p1, %p1060_p0 }
  0x1e   : > { %282 = vperm.xlu0 %1012, %v274_v2   ;;  %905 = vmatpush3.bf16.msra.mxu1 %v1040_v40  ;;  %v1051_v2 = vld [vmem:[%s1414_s4 + $0xb8] sm:$0xff]  }
  0x1f   : > { %938 = vmatpush3.bf16.msra.mxu0 %v1027_v12  ;;  %906 = vmatprep.subr.bf16.mxu1 %v1041_v56  ;;  %p1056_p13 = pneg %p1055_p12 }
  0x20   : > { %939 = vmatprep.subr.bf16.mxu0 %v1118_v4 }
  0x21   : > { %p1063_p3 = pnand %p1062_p2, %p1056_p13 }
  0x22   : > { %907 = vmatpush3.bf16.msra.mxu1 %v1043_v58 }
  0x23   : > { %940 = vmatpush3.bf16.msra.mxu0 %v1028_v17  ;;  %908 = vmatprep.subr.bf16.mxu1 %v1044_v59 }
  0x24   : > { %945 = vmatprep.subr.bf16.mxu0 %v1118_v4 }
  0x26   : > { %909 = vmatpush3.bf16.msra.mxu1 %v1046_v61 }
  0x27   : > { %910 = vmatprep.subr.bf16.mxu1 %v1047_v62 }
  0x2a   : > { %911 = vmatpush3.bf16.msra.mxu1 %v1049_v0 }
  0x2b   : > { %912 = vmatprep.subr.bf16.mxu1 %v1050_v1 }
  0x2e   : > { %913 = vmatpush3.bf16.msra.mxu1 %v1052_v3 }
  0x99   : > { %v1234_v9 = vpop.permute.xlu0 %277 }
  0x9a   : > { %v285_v10 = vmul.f32 %v1234_v9, %v271_v8 }
  0x9c   : > { %v290_v13 = vrot.slane %v285_v10, 7 }
  0x9d   : > { %v1240_v14 = vpop.permute.xlu0 %282 }
  0x9e   : > { %v286_v15 = vmul.f32 %v1240_v14, %v272_v11  ;;  %v296_v16 = vsel %vm289_vm0, 0.0, %v290_v13 }
  0x9f   : > { %v301_v21 = vrot.slane %v296_v16, 1  ;;  %v313_v27 = vrot.slane %v296_v16, 2 }
  0xa0   : > { %v291_v18 = vrot.slane %v286_v15, 7 }
  0xa2   : > { %v292_v19 = vsel %vm289_vm0, %v290_v13, %v291_v18  ;;  %v297_v20 = vsel %vm289_vm0, %v291_v18, 0.0 }
  0xa3   : > { %v304_v22 = vrot.slane %v297_v20, 1  ;;  %v314_v23 = vrot.slane %v292_v19, 2  ;;  %v316_v24 = vrot.slane %v297_v20, 2  ;;  %v302_v25 = vrot.slane %v292_v19, 1 }
  0xa5   : > { %v303_v28 = vsel %vm300_vm1, %v301_v21, %v302_v25  ;;  %v305_v29 = vsel %vm300_vm1, %v302_v25, %v304_v22  ;;  %v315_v33 = vsel %vm312_vm3, %v313_v27, %v314_v23  ;;  %v317_v34 = vsel %vm312_vm3, %v314_v23, %v316_v24 }
  0xa6   : > { %v1013_v31 = vpack.i.bf16 %v305_v29, %v303_v28  ;;  %v1018_v36 = vpack.i.bf16 %v317_v34, %v315_v33 }
  0xa8   : > { %1014 = vrot.lane.b32.xlu1 %v1013_v31, %s1120_s20 }
  0xac   : > { %1019 = vrot.lane.b32.xlu1 %v1018_v36, %s1121_s11  ;;  %s890_s11 = sshll.u32 %s1182_s25, 8  ;;  %s1369_s25 = scalar_lea.sflag [#allocation3], %s257_s26 }
  0xad   : > { %s1362_s15 = scalar_lea.hbm %s1416_s6, %s890_s11 }
 0x11a   : > { %v1015_v41 = vpop.permute.xlu1 %1014 }
 0x11b   : > { %v1017_v42 = vunpack.i.h.bf16 %v1015_v41  ;;  %v1016_v43 = vunpack.i.l.bf16 %v1015_v41 }
 0x11d   : > { %v326_v47 = vsel %vm324_vm4, %v292_v19, %v1017_v42  ;;  %v325_v48 = vsel %vm324_vm4, %v296_v16, %v1016_v43 }
 0x11e   : > { %v1020_v44 = vpop.permute.xlu1 %1019 }
 0x11f   : > { %v1022_v45 = vunpack.i.h.bf16 %v1020_v44  ;;  %v1021_v46 = vunpack.i.l.bf16 %v1020_v44 }
 0x121   : > { %v328_v49 = vsel %vm327_vm5, %v325_v48, %v1021_v46  ;;  %v329_v50 = vsel %vm327_vm5, %v326_v47, %v1022_v45 }
 0x122   : > { %v330_v52 = vpack.c.bf16 %v329_v50, %v328_v49 }
 0x124   : > { %942 = vmatmul.mubr.msk.bf16.vlgmr.msra.gmra.mrb[0].mxu0 %vm386_vm6, %v330_v52 }
 0x125   : > { %946 = vmatpush3.bf16.msra.mxu0 %v1030_v51  ;;  %961 = vmatprep.mubr.msk.bf16.mxu0 %vm1119_vm2, %v1118_v4 }
 0x126   : > { %947 = vmatprep.subr.bf16.mxu0 %v1118_v4 }
 0x129   : > { %948 = vmatpush3.bf16.msra.mxu0 %v1033_v53 }
 0x12a   : > { %949 = vmatprep.subr.bf16.mxu0 %v1118_v4 }
 0x12d   : > { %950 = vmatpush3.bf16.msra.mxu0 %v1036_v54 }
 0x12e   : > { %951 = vmatprep.subr.bf16.mxu0 %v1118_v4 }
 0x131   : > { %952 = vmatpush3.bf16.msra.mxu0 %v1039_v55 }
 0x132   : > { %953 = vmatprep.subr.bf16.mxu0 %v1118_v4 }
 0x135   : > { %954 = vmatpush3.bf16.msra.mxu0 %v1042_v57 }
 0x136   : > { %955 = vmatprep.subr.bf16.mxu0 %v1118_v4 }
 0x139   : > { %956 = vmatpush3.bf16.msra.mxu0 %v1045_v60 }
 0x13a   : > { %957 = vmatprep.subr.bf16.mxu0 %v1118_v4 }
 0x13d   : > { %958 = vmatpush3.bf16.msra.mxu0 %v1048_v63 }
 0x13e   : > { %959 = vmatprep.subr.bf16.mxu0 %v1118_v4 }
 0x141   : > { %960 = vmatpush3.bf16.msra.mxu0 %v1051_v2 }
 0x1f7   : > { %v424_v4 = vpop.f32.mrb[0].mxu0 }
 0x1f8   : > { %v425_v6 = vadd.f32 %v846_v5, %v424_v4  ;;  %v943_v7 = vpop.f32.mrb[1].mxu0 }
 0x1f9   : > { %v427_v8 = vpop.f32.mrb[2].mxu0 }
 0x1fa   : > { %v431_v10 = vmax.f32 %v425_v6, 0.0  ;;  %v428_v11 = vadd.f32 %v846_v5, %v427_v8  ;;  %v944_v12 = vpop.f32.mrb[3].mxu0 }
 0x1fc   : > { %v433_v13 = vmul.f32 %v431_v10, %v1234_v9  ;;  %v432_v15 = vmax.f32 %v428_v11, 0.0 }
 0x1fe   : > { %v437_v16 = vrot.slane %v433_v13, 7  ;;  %v434_v17 = vmul.f32 %v432_v15, %v1240_v14 }
 0x200   : > { %v438_v18 = vrot.slane %v434_v17, 7  ;;  %v443_v19 = vsel %vm289_vm0, 0.0, %v437_v16 }
 0x201   : > { %v447_v22 = vrot.slane %v443_v19, 1  ;;  %v454_v23 = vrot.slane %v443_v19, 2 }
 0x202   : > { %v444_v20 = vsel %vm289_vm0, %v438_v18, 0.0  ;;  %v439_v21 = vsel %vm289_vm0, %v437_v16, %v438_v18 }
 0x203   : > { %v457_v24 = vrot.slane %v444_v20, 2  ;;  %v448_v25 = vrot.slane %v439_v21, 1  ;;  %v450_v26 = vrot.slane %v444_v20, 1  ;;  %v455_v27 = vrot.slane %v439_v21, 2 }
 0x204   : > { %v881_v28 = vpack.c.bf16 %v439_v21, %v437_v16 }
 0x205   : > { %v449_v29 = vsel %vm300_vm1, %v447_v22, %v448_v25  ;;  %v451_v30 = vsel %vm300_vm1, %v448_v25, %v450_v26  ;;  %v456_v31 = vsel %vm312_vm3, %v454_v23, %v455_v27  ;;  %v458_v32 = vsel %vm312_vm3, %v455_v27, %v457_v24 }
 0x206   : > { %v462_v33 = vpack.c.bf16 %v451_v30, %v449_v29  ;;  %v463_v34 = vpack.c.bf16 %v458_v32, %v456_v31 }
 0x208   : > { %695 = vmatprep.mubr.bf16.mxu1 %v462_v33  ;;  %962 = vmatmul.mubr.bf16.vlgmr.msra.gmra.mrb[4].mxu0 %v463_v34 }
 0x209   : > { %882 = vmatmul.mubr.msk.bf16.vlgmr.msra.gmra.mrb[0].mxu1 %vm880_vm9, %v881_v28 }
 0x2db   : > { %v738_v35 = vpop.f32.mrb[4].mxu0 }
 0x2dc   : > { %v914_v36 = vpop.f32.mrb[0].mxu1  ;;  %v963_v37 = vpop.f32.mrb[5].mxu0 }
 0x2dd   : > { %v915_v39 = vpop.f32.mrb[1].mxu1  ;;  %v741_v40 = vpop.f32.mrb[6].mxu0 }
 0x2de   : > { %v916_v41 = vadd.f32 %v915_v39, %v914_v36  ;;  %v917_v42 = vpop.f32.mrb[2].mxu1  ;;  %v964_v43 = vpop.f32.mrb[7].mxu0 }
 0x2df   : > { %v918_v44 = vpop.f32.mrb[3].mxu1 }
 0x2e0   : > { %v698_v45 = vadd.f32 %v916_v41, %v854_v38  ;;  %v919_v46 = vadd.f32 %v918_v44, %v917_v42 }
 0x2e2   : > { %v739_v47 = vadd.f32 %v738_v35, %v698_v45  ;;  %v701_v48 = vadd.f32 %v919_v46, %v854_v38 }
 0x2e4   : > { %v745_v49 = vmul.f32 %v739_v47, %v1234_v9  ;;  %v742_v50 = vadd.f32 %v741_v40, %v701_v48 }
 0x2e6   : > { %747 = vst.msk [vmem:[%s259_s12] sm:$0xff] %vm324_vm4, %v745_v49  ;;  %v746_v51 = vmul.f32 %v742_v50, %v1240_v14 }
 0x2e8   : > { %748 = vst.msk [vmem:[%s259_s12 + $0x8] sm:$0xff] %vm324_vm4, %v746_v51 }
 0x2e9   : > { %1066 = shalt.err (!%p1063_p3)
}
 0x2ea   : > { %s1067_s20 = scalar_lea.hbm %s1362_s15, 256  ;;  %s1071_s29 = scalar_lea.hbm %s1416_s6, 512 }
 0x2eb   : > { %p1068_p4 = scmp.ne.s32.totalorder %s1362_s15, %s1067_s20  ;;  %p1072_p9 = scmp.lt.u32.totalorder %s1362_s15, %s1416_s6 }
 0x2ec   : > { %p1073_p10 = scmp.lt.u32.totalorder %s1071_s29, %s1067_s20  ;;  %p1075_p12 = scmp.lt.u32.totalorder %s1067_s20, %s1362_s15 }
 0x2ed   : > { %p1069_p7 = pnand %p1068_p4, %p1199_p5 }
 0x2ee   : > { %p1074_p11 = por %p1073_p10, %p1072_p9 }
 0x2ef   : > { %p1070_p8 = pneg %p1069_p7 }
 0x2f0   : > { %p1076_p13 = por %p1075_p12, %p1074_p11 }
 0x2f2   : > { %p1077_p0 = pnand %p1076_p13, %p1070_p8 }
 0x2f4   : > { %1080 = shalt.err (!%p1077_p0)
}
 0x2f5   : > { %s1124_s12 = smov 128   ;;  %s1125_s13 = smov 8  }
 0x2f6   : > { %965 = dma.vmem_to_hbm [thread:$0]  (%p1199_p5), %s1364_s10, 256, %s1362_s15, %s1369_s25, %s1124_s12, %s1124_s12, %s1125_s13  }
 0x2f7 PF: > { %p971_p1 = scmp.ge.s32.totalorder %s1115_s24, 2  ;;  %s778_s14 = sand.u32 1, %s1103_s21  }
 0x2f8   : > { %s779_s16 = scalar_lea.sflag [#allocation3], %s778_s14 }
 0x2f9   : > { %p968_p2 = pnand %p971_p1, %p1203_p6 }
 0x2fb   : > { %1098 = dma.done.wait (!%p968_p2), %s779_s16, 256  }
 0x2fc   : > { %1100 = vsyncadd (!%p968_p2), %s779_s16, 4294967040  ;;  %p16_p3 = scmp.ge.s32.totalorder %s1186_s27, 4   ;;  %s1419_s21 = smov %s1107_s22 }
 0x2fd   : > { %s1420_s22 = smov %s1111_s23  ;;  %s1421_s23 = smov %s1197_s30 }
 0x2fe   : > { %s1422_s24 = smov %s1186_s27  ;;  %18 = sbr.rel (!%p16_p3) target bundleno = 3 (0x3), region = 82 }
 0x305   :  { %784 = vsyncpa [#allocation3], 1 }
 0x306   :  { %786 = vsyncpa [#allocation3 + $0x1], 1 }

</bundles_post_ra>
